<compile_context>
chip_gen: v6e
topology: v6e:2x2x1
jax: 0.10.0
libtpu: 0.0.40
codegen_flags: <defaults>
</compile_context>

<pallas_src>
import jax
import jax.numpy as jnp
from jax.experimental import pallas as pl
from jax.experimental.pallas import tpu as pltpu


def encoder_gru_seq_kernel(x_ref, h0_ref, wih_ref, whh_ref, bih_ref, bhh_ref,
                           out_ref):
    """Fused multi-timestep GRU.

    x_ref  : (S, I)   embedded input rows, one per timestep
    h0_ref : (1, H)   initial hidden state
    wih_ref: (I, 3H)  input-to-hidden weights, gates [r|z|n] concatenated on lanes
    whh_ref: (H, 3H)  hidden-to-hidden weights, gates [r|z|n]
    bih_ref: (1, 3H)  input bias
    bhh_ref: (1, 3H)  hidden bias
    out_ref: (S, H)   per-step GRU outputs (row t == hidden after step t)
    """
    S = x_ref.shape[0]
    H = h0_ref.shape[-1]

    # Load weights/biases once; they stay resident for the whole sequence.
    w_ih = wih_ref[...]
    w_hh = whh_ref[...]
    b_ih = bih_ref[...]
    b_hh = bhh_ref[...]

    h = h0_ref[...].astype(jnp.float32)                       # (1, H)

    # Fully unrolled time loop (S is small & static): the recurrent hidden
    # state never leaves vregs and there is zero per-step launch overhead.
    for t in range(S):
        x = x_ref[pl.ds(t, 1), :].astype(jnp.float32)          # (1, I)

        gi = jnp.dot(x, w_ih, preferred_element_type=jnp.float32) + b_ih  # (1, 3H)
        gh = jnp.dot(h, w_hh, preferred_element_type=jnp.float32) + b_hh  # (1, 3H)

        r = jax.nn.sigmoid(gi[:, 0:H] + gh[:, 0:H])
        z = jax.nn.sigmoid(gi[:, H:2 * H] + gh[:, H:2 * H])
        n = jnp.tanh(gi[:, 2 * H:3 * H] + r * gh[:, 2 * H:3 * H])
        h = (1.0 - z) * n + z * h

        out_ref[pl.ds(t, 1), :] = h.astype(out_ref.dtype)


def encoder_rnn_sequence(params, token_ids, hidden0):
    """Run the EncoderRNN over a whole token sequence in ONE fused kernel.

    token_ids: (S,) int32
    hidden0  : (1, 1, H)
    returns  : (outputs (S, 1, H), hidden (1, 1, H))   -- nn.GRU conventions
    """
    S = int(token_ids.shape[0])
    H = params["w_hh"].shape[0]

    # Embedding lookup (what nn.Embedding does): one gather for the whole
    # sequence, fused by XLA around the kernel.
    x_seq = jnp.take(params["embedding"], token_ids, axis=0).astype(jnp.float32)  # (S, I)
    h0 = hidden0.reshape(1, H).astype(jnp.float32)

    vmem = pl.BlockSpec(memory_space=pltpu.MemorySpace.VMEM)
    out = pl.pallas_call(
        encoder_gru_seq_kernel,
        out_shape=jax.ShapeDtypeStruct((S, H), jnp.float32),
        in_specs=[vmem] * 6,
        out_specs=vmem,
    )(x_seq, h0, params["w_ih"], params["w_hh"], params["b_ih"], params["b_hh"])

    outputs = out.reshape(S, 1, H)            # (seq, batch=1, hidden)
    hidden = out[S - 1:S].reshape(1, 1, H)    # final hidden == last output (1-layer GRU)
    return outputs, hidden


def encoder_rnn_forward(params, token_id, hidden):
    """Mirrors EncoderRNN.forward for a single token (seq_len == 1)."""
    token_ids = jnp.reshape(token_id, (1,)).astype(jnp.int32)
    outputs, hidden = encoder_rnn_sequence(params, token_ids, hidden)
    return outputs, hidden                    # both (1, 1, H)


def init_hidden(hidden_size):
    return jnp.zeros((1, 1, hidden_size), jnp.float32)


def init_params(key, word_num, input_size, hidden_size):
    """Deterministic synthetic params in the fused lane-concatenated layout.

    PyTorch's GRU stores weight_ih_l0 as (3H, I) with gate order [r, z, n];
    here we store its transpose (I, 3H) so each step is a single x @ W_ih.
    """
    k_emb, k_wih, k_whh, k_bih, k_bhh = jax.random.split(key, 5)
    bound = 1.0 / jnp.sqrt(hidden_size)
    return {
        "embedding": jax.random.normal(k_emb, (word_num, input_size),
                                       dtype=jnp.float32),
        "w_ih": jax.random.uniform(k_wih, (input_size, 3 * hidden_size),
                                   minval=-bound, maxval=bound,
                                   dtype=jnp.float32),
        "w_hh": jax.random.uniform(k_whh, (hidden_size, 3 * hidden_size),
                                   minval=-bound, maxval=bound,
                                   dtype=jnp.float32),
        "b_ih": jax.random.uniform(k_bih, (1, 3 * hidden_size),
                                   minval=-bound, maxval=bound,
                                   dtype=jnp.float32),
        "b_hh": jax.random.uniform(k_bhh, (1, 3 * hidden_size),
                                   minval=-bound, maxval=bound,
                                   dtype=jnp.float32),
    }


def reference_sequence(params, token_ids, hidden0):
    """Pure-JAX reference of the same GRU math (per-step loop)."""
    H = params["w_hh"].shape[0]
    x_seq = jnp.take(params["embedding"], token_ids, axis=0)
    h = hidden0.reshape(1, H)
    outs = []
    for t in range(token_ids.shape[0]):
        x = x_seq[t:t + 1]
        gi = x @ params["w_ih"] + params["b_ih"]
        gh = h @ params["w_hh"] + params["b_hh"]
        r = jax.nn.sigmoid(gi[:, 0:H] + gh[:, 0:H])
        z = jax.nn.sigmoid(gi[:, H:2 * H] + gh[:, H:2 * H])
        n = jnp.tanh(gi[:, 2 * H:3 * H] + r * gh[:, 2 * H:3 * H])
        h = (1.0 - z) * n + z * h
        outs.append(h)
    out = jnp.concatenate(outs, axis=0)
    return out.reshape(-1, 1, H), h.reshape(1, 1, H)


if __name__ == "__main__":
    word_num, input_size, hidden_size, seq_len = 100, 32, 32, 8

    key = jax.random.PRNGKey(0)
    k_params, k_tokens = jax.random.split(key)
    params = init_params(k_params, word_num, input_size, hidden_size)
    token_ids = jax.random.randint(k_tokens, (seq_len,), 0, word_num,
                                   dtype=jnp.int32)
    hidden0 = init_hidden(hidden_size)

    # Fused whole-sequence encoder (one pallas_call for all timesteps).
    seq_fn = jax.jit(encoder_rnn_sequence)
    outputs, hidden_final = seq_fn(params, token_ids, hidden0)
    jax.block_until_ready((outputs, hidden_final))

    assert outputs.shape == (seq_len, 1, hidden_size)
    assert hidden_final.shape == (1, 1, hidden_size)

    ref_out, ref_hid = reference_sequence(params, token_ids, hidden0)
    assert jnp.allclose(outputs, ref_out, atol=1e-4, rtol=1e-4)
    assert jnp.allclose(hidden_final, ref_hid, atol=1e-4, rtol=1e-4)
    # 1-layer GRU: final hidden equals last output.
    assert jnp.allclose(hidden_final[0], outputs[-1], atol=0.0)

    # Single-token call mirroring EncoderRNN.forward(input, hidden).
    out1, hid1 = encoder_rnn_forward(params, token_ids[0], hidden0)
    jax.block_until_ready((out1, hid1))
    ref_out1, ref_hid1 = reference_sequence(params, token_ids[:1], hidden0)
    assert out1.shape == (1, 1, hidden_size)
    assert hid1.shape == (1, 1, hidden_size)
    assert jnp.allclose(out1, ref_out1, atol=1e-4, rtol=1e-4)
    assert jnp.allclose(hid1, ref_hid1, atol=1e-4, rtol=1e-4)

    print("KERNEL_OK")
</pallas_src>

<mosaic_0001>
module attributes {stable_mosaic.version = 11 : i64} {
  func.func @encoder_gru_seq_kernel(%arg0: memref<8x32xf32, #tpu.memory_space<vmem>>, %arg1: memref<1x32xf32, #tpu.memory_space<vmem>>, %arg2: memref<32x96xf32, #tpu.memory_space<vmem>>, %arg3: memref<32x96xf32, #tpu.memory_space<vmem>>, %arg4: memref<1x96xf32, #tpu.memory_space<vmem>>, %arg5: memref<1x96xf32, #tpu.memory_space<vmem>>, %arg6: memref<8x32xf32, #tpu.memory_space<vmem>>) attributes {dimension_semantics = [], scalar_prefetch = 0 : i64, scratch_operands = 0 : i64, tpu.core_type = #tpu.core_type<tc>} {
    %c0 = arith.constant 0 : index
    %c0_0 = arith.constant 0 : index
    %0 = vector.load %arg2[%c0, %c0_0] : memref<32x96xf32, #tpu.memory_space<vmem>>, vector<32x96xf32>
    %c0_1 = arith.constant 0 : index
    %c0_2 = arith.constant 0 : index
    %1 = vector.load %arg3[%c0_1, %c0_2] : memref<32x96xf32, #tpu.memory_space<vmem>>, vector<32x96xf32>
    %c0_3 = arith.constant 0 : index
    %c0_4 = arith.constant 0 : index
    %2 = vector.load %arg4[%c0_3, %c0_4] : memref<1x96xf32, #tpu.memory_space<vmem>>, vector<1x96xf32>
    %c0_5 = arith.constant 0 : index
    %c0_6 = arith.constant 0 : index
    %3 = vector.load %arg5[%c0_5, %c0_6] : memref<1x96xf32, #tpu.memory_space<vmem>>, vector<1x96xf32>
    %c0_7 = arith.constant 0 : index
    %c0_8 = arith.constant 0 : index
    %4 = vector.load %arg1[%c0_7, %c0_8] : memref<1x32xf32, #tpu.memory_space<vmem>>, vector<1x32xf32>
    %c0_9 = arith.constant 0 : index
    %c0_10 = arith.constant 0 : index
    %5 = vector.load %arg0[%c0_9, %c0_10] : memref<8x32xf32, #tpu.memory_space<vmem>>, vector<1x32xf32>
    %cst = arith.constant dense<0.000000e+00> : vector<1x96xf32>
    %6 = tpu.matmul %5, %0, %cst {dimension_numbers = #tpu.dot_dimension_numbers<[1], [0], [0], [1], [0, 0, 1, 1], [], []>} : vector<1x32xf32>, vector<32x96xf32>, vector<1x96xf32> -> vector<1x96xf32>
    %7 = arith.addf %6, %2 : vector<1x96xf32>
    %cst_11 = arith.constant dense<0.000000e+00> : vector<1x96xf32>
    %8 = tpu.matmul %4, %1, %cst_11 {dimension_numbers = #tpu.dot_dimension_numbers<[1], [0], [0], [1], [0, 0, 1, 1], [], []>} : vector<1x32xf32>, vector<32x96xf32>, vector<1x96xf32> -> vector<1x96xf32>
    %9 = arith.addf %8, %3 : vector<1x96xf32>
    %10 = vector.extract_strided_slice %7 {offsets = [0, 0], sizes = [1, 32], strides = [1, 1]} : vector<1x96xf32> to vector<1x32xf32>
    %11 = vector.extract_strided_slice %9 {offsets = [0, 0], sizes = [1, 32], strides = [1, 1]} : vector<1x96xf32> to vector<1x32xf32>
    %12 = arith.addf %10, %11 : vector<1x32xf32>
    %13 = arith.negf %12 : vector<1x32xf32>
    %14 = math.exp %13 : vector<1x32xf32>
    %cst_12 = arith.constant 1.000000e+00 : f32
    %15 = vector.broadcast %cst_12 : f32 to vector<1x32xf32>
    %16 = arith.addf %15, %14 : vector<1x32xf32>
    %17 = arith.divf %15, %16 : vector<1x32xf32>
    %18 = vector.extract_strided_slice %7 {offsets = [0, 32], sizes = [1, 32], strides = [1, 1]} : vector<1x96xf32> to vector<1x32xf32>
    %19 = vector.extract_strided_slice %9 {offsets = [0, 32], sizes = [1, 32], strides = [1, 1]} : vector<1x96xf32> to vector<1x32xf32>
    %20 = arith.addf %18, %19 : vector<1x32xf32>
    %21 = arith.negf %20 : vector<1x32xf32>
    %22 = math.exp %21 : vector<1x32xf32>
    %cst_13 = arith.constant 1.000000e+00 : f32
    %23 = vector.broadcast %cst_13 : f32 to vector<1x32xf32>
    %24 = arith.addf %23, %22 : vector<1x32xf32>
    %25 = arith.divf %23, %24 : vector<1x32xf32>
    %26 = vector.extract_strided_slice %7 {offsets = [0, 64], sizes = [1, 32], strides = [1, 1]} : vector<1x96xf32> to vector<1x32xf32>
    %27 = vector.extract_strided_slice %9 {offsets = [0, 64], sizes = [1, 32], strides = [1, 1]} : vector<1x96xf32> to vector<1x32xf32>
    %28 = arith.mulf %17, %27 : vector<1x32xf32>
    %29 = arith.addf %26, %28 : vector<1x32xf32>
    %30 = math.tanh %29 : vector<1x32xf32>
    %cst_14 = arith.constant 1.000000e+00 : f32
    %31 = vector.broadcast %cst_14 : f32 to vector<1x32xf32>
    %32 = arith.subf %31, %25 : vector<1x32xf32>
    %33 = arith.mulf %32, %30 : vector<1x32xf32>
    %34 = arith.mulf %25, %4 : vector<1x32xf32>
    %35 = arith.addf %33, %34 : vector<1x32xf32>
    %c0_15 = arith.constant 0 : index
    %c0_16 = arith.constant 0 : index
    %36 = vector.load %arg6[%c0_15, %c0_16] : memref<8x32xf32, #tpu.memory_space<vmem>>, vector<1x32xf32>
    tpu.vector_store %arg6[%c0_15, %c0_16], %35 {strides = array<i32>} : memref<8x32xf32, #tpu.memory_space<vmem>>, vector<1x32xf32>,
    %c1 = arith.constant 1 : index
    %c0_17 = arith.constant 0 : index
    %37 = vector.load %arg0[%c1, %c0_17] : memref<8x32xf32, #tpu.memory_space<vmem>>, vector<1x32xf32>
    %cst_18 = arith.constant dense<0.000000e+00> : vector<1x96xf32>
    %38 = tpu.matmul %37, %0, %cst_18 {dimension_numbers = #tpu.dot_dimension_numbers<[1], [0], [0], [1], [0, 0, 1, 1], [], []>} : vector<1x32xf32>, vector<32x96xf32>, vector<1x96xf32> -> vector<1x96xf32>
    %39 = arith.addf %38, %2 : vector<1x96xf32>
    %cst_19 = arith.constant dense<0.000000e+00> : vector<1x96xf32>
    %40 = tpu.matmul %35, %1, %cst_19 {dimension_numbers = #tpu.dot_dimension_numbers<[1], [0], [0], [1], [0, 0, 1, 1], [], []>} : vector<1x32xf32>, vector<32x96xf32>, vector<1x96xf32> -> vector<1x96xf32>
    %41 = arith.addf %40, %3 : vector<1x96xf32>
    %42 = vector.extract_strided_slice %39 {offsets = [0, 0], sizes = [1, 32], strides = [1, 1]} : vector<1x96xf32> to vector<1x32xf32>
    %43 = vector.extract_strided_slice %41 {offsets = [0, 0], sizes = [1, 32], strides = [1, 1]} : vector<1x96xf32> to vector<1x32xf32>
    %44 = arith.addf %42, %43 : vector<1x32xf32>
    %45 = arith.negf %44 : vector<1x32xf32>
    %46 = math.exp %45 : vector<1x32xf32>
    %cst_20 = arith.constant 1.000000e+00 : f32
    %47 = vector.broadcast %cst_20 : f32 to vector<1x32xf32>
    %48 = arith.addf %47, %46 : vector<1x32xf32>
    %49 = arith.divf %47, %48 : vector<1x32xf32>
    %50 = vector.extract_strided_slice %39 {offsets = [0, 32], sizes = [1, 32], strides = [1, 1]} : vector<1x96xf32> to vector<1x32xf32>
    %51 = vector.extract_strided_slice %41 {offsets = [0, 32], sizes = [1, 32], strides = [1, 1]} : vector<1x96xf32> to vector<1x32xf32>
    %52 = arith.addf %50, %51 : vector<1x32xf32>
    %53 = arith.negf %52 : vector<1x32xf32>
    %54 = math.exp %53 : vector<1x32xf32>
    %cst_21 = arith.constant 1.000000e+00 : f32
    %55 = vector.broadcast %cst_21 : f32 to vector<1x32xf32>
    %56 = arith.addf %55, %54 : vector<1x32xf32>
    %57 = arith.divf %55, %56 : vector<1x32xf32>
    %58 = vector.extract_strided_slice %39 {offsets = [0, 64], sizes = [1, 32], strides = [1, 1]} : vector<1x96xf32> to vector<1x32xf32>
    %59 = vector.extract_strided_slice %41 {offsets = [0, 64], sizes = [1, 32], strides = [1, 1]} : vector<1x96xf32> to vector<1x32xf32>
    %60 = arith.mulf %49, %59 : vector<1x32xf32>
    %61 = arith.addf %58, %60 : vector<1x32xf32>
    %62 = math.tanh %61 : vector<1x32xf32>
    %cst_22 = arith.constant 1.000000e+00 : f32
    %63 = vector.broadcast %cst_22 : f32 to vector<1x32xf32>
    %64 = arith.subf %63, %57 : vector<1x32xf32>
    %65 = arith.mulf %64, %62 : vector<1x32xf32>
    %66 = arith.mulf %57, %35 : vector<1x32xf32>
    %67 = arith.addf %65, %66 : vector<1x32xf32>
    %c1_23 = arith.constant 1 : index
    %c0_24 = arith.constant 0 : index
    %68 = vector.load %arg6[%c1_23, %c0_24] : memref<8x32xf32, #tpu.memory_space<vmem>>, vector<1x32xf32>
    tpu.vector_store %arg6[%c1_23, %c0_24], %67 {strides = array<i32>} : memref<8x32xf32, #tpu.memory_space<vmem>>, vector<1x32xf32>,
    %c2 = arith.constant 2 : index
    %c0_25 = arith.constant 0 : index
    %69 = vector.load %arg0[%c2, %c0_25] : memref<8x32xf32, #tpu.memory_space<vmem>>, vector<1x32xf32>
    %cst_26 = arith.constant dense<0.000000e+00> : vector<1x96xf32>
    %70 = tpu.matmul %69, %0, %cst_26 {dimension_numbers = #tpu.dot_dimension_numbers<[1], [0], [0], [1], [0, 0, 1, 1], [], []>} : vector<1x32xf32>, vector<32x96xf32>, vector<1x96xf32> -> vector<1x96xf32>
    %71 = arith.addf %70, %2 : vector<1x96xf32>
    %cst_27 = arith.constant dense<0.000000e+00> : vector<1x96xf32>
    %72 = tpu.matmul %67, %1, %cst_27 {dimension_numbers = #tpu.dot_dimension_numbers<[1], [0], [0], [1], [0, 0, 1, 1], [], []>} : vector<1x32xf32>, vector<32x96xf32>, vector<1x96xf32> -> vector<1x96xf32>
    %73 = arith.addf %72, %3 : vector<1x96xf32>
    %74 = vector.extract_strided_slice %71 {offsets = [0, 0], sizes = [1, 32], strides = [1, 1]} : vector<1x96xf32> to vector<1x32xf32>
    %75 = vector.extract_strided_slice %73 {offsets = [0, 0], sizes = [1, 32], strides = [1, 1]} : vector<1x96xf32> to vector<1x32xf32>
    %76 = arith.addf %74, %75 : vector<1x32xf32>
    %77 = arith.negf %76 : vector<1x32xf32>
    %78 = math.exp %77 : vector<1x32xf32>
    %cst_28 = arith.constant 1.000000e+00 : f32
    %79 = vector.broadcast %cst_28 : f32 to vector<1x32xf32>
    %80 = arith.addf %79, %78 : vector<1x32xf32>
    %81 = arith.divf %79, %80 : vector<1x32xf32>
    %82 = vector.extract_strided_slice %71 {offsets = [0, 32], sizes = [1, 32], strides = [1, 1]} : vector<1x96xf32> to vector<1x32xf32>
    %83 = vector.extract_strided_slice %73 {offsets = [0, 32], sizes = [1, 32], strides = [1, 1]} : vector<1x96xf32> to vector<1x32xf32>
    %84 = arith.addf %82, %83 : vector<1x32xf32>
    %85 = arith.negf %84 : vector<1x32xf32>
    %86 = math.exp %85 : vector<1x32xf32>
    %cst_29 = arith.constant 1.000000e+00 : f32
    %87 = vector.broadcast %cst_29 : f32 to vector<1x32xf32>
    %88 = arith.addf %87, %86 : vector<1x32xf32>
    %89 = arith.divf %87, %88 : vector<1x32xf32>
    %90 = vector.extract_strided_slice %71 {offsets = [0, 64], sizes = [1, 32], strides = [1, 1]} : vector<1x96xf32> to vector<1x32xf32>
    %91 = vector.extract_strided_slice %73 {offsets = [0, 64], sizes = [1, 32], strides = [1, 1]} : vector<1x96xf32> to vector<1x32xf32>
    %92 = arith.mulf %81, %91 : vector<1x32xf32>
    %93 = arith.addf %90, %92 : vector<1x32xf32>
    %94 = math.tanh %93 : vector<1x32xf32>
    %cst_30 = arith.constant 1.000000e+00 : f32
    %95 = vector.broadcast %cst_30 : f32 to vector<1x32xf32>
    %96 = arith.subf %95, %89 : vector<1x32xf32>
    %97 = arith.mulf %96, %94 : vector<1x32xf32>
    %98 = arith.mulf %89, %67 : vector<1x32xf32>
    %99 = arith.addf %97, %98 : vector<1x32xf32>
    %c2_31 = arith.constant 2 : index
    %c0_32 = arith.constant 0 : index
    %100 = vector.load %arg6[%c2_31, %c0_32] : memref<8x32xf32, #tpu.memory_space<vmem>>, vector<1x32xf32>
    tpu.vector_store %arg6[%c2_31, %c0_32], %99 {strides = array<i32>} : memref<8x32xf32, #tpu.memory_space<vmem>>, vector<1x32xf32>,
    %c3 = arith.constant 3 : index
    %c0_33 = arith.constant 0 : index
    %101 = vector.load %arg0[%c3, %c0_33] : memref<8x32xf32, #tpu.memory_space<vmem>>, vector<1x32xf32>
    %cst_34 = arith.constant dense<0.000000e+00> : vector<1x96xf32>
    %102 = tpu.matmul %101, %0, %cst_34 {dimension_numbers = #tpu.dot_dimension_numbers<[1], [0], [0], [1], [0, 0, 1, 1], [], []>} : vector<1x32xf32>, vector<32x96xf32>, vector<1x96xf32> -> vector<1x96xf32>
    %103 = arith.addf %102, %2 : vector<1x96xf32>
    %cst_35 = arith.constant dense<0.000000e+00> : vector<1x96xf32>
    %104 = tpu.matmul %99, %1, %cst_35 {dimension_numbers = #tpu.dot_dimension_numbers<[1], [0], [0], [1], [0, 0, 1, 1], [], []>} : vector<1x32xf32>, vector<32x96xf32>, vector<1x96xf32> -> vector<1x96xf32>
    %105 = arith.addf %104, %3 : vector<1x96xf32>
    %106 = vector.extract_strided_slice %103 {offsets = [0, 0], sizes = [1, 32], strides = [1, 1]} : vector<1x96xf32> to vector<1x32xf32>
    %107 = vector.extract_strided_slice %105 {offsets = [0, 0], sizes = [1, 32], strides = [1, 1]} : vector<1x96xf32> to vector<1x32xf32>
    %108 = arith.addf %106, %107 : vector<1x32xf32>
    %109 = arith.negf %108 : vector<1x32xf32>
    %110 = math.exp %109 : vector<1x32xf32>
    %cst_36 = arith.constant 1.000000e+00 : f32
    %111 = vector.broadcast %cst_36 : f32 to vector<1x32xf32>
    %112 = arith.addf %111, %110 : vector<1x32xf32>
    %113 = arith.divf %111, %112 : vector<1x32xf32>
    %114 = vector.extract_strided_slice %103 {offsets = [0, 32], sizes = [1, 32], strides = [1, 1]} : vector<1x96xf32> to vector<1x32xf32>
    %115 = vector.extract_strided_slice %105 {offsets = [0, 32], sizes = [1, 32], strides = [1, 1]} : vector<1x96xf32> to vector<1x32xf32>
    %116 = arith.addf %114, %115 : vector<1x32xf32>
    %117 = arith.negf %116 : vector<1x32xf32>
    %118 = math.exp %117 : vector<1x32xf32>
    %cst_37 = arith.constant 1.000000e+00 : f32
    %119 = vector.broadcast %cst_37 : f32 to vector<1x32xf32>
    %120 = arith.addf %119, %118 : vector<1x32xf32>
    %121 = arith.divf %119, %120 : vector<1x32xf32>
    %122 = vector.extract_strided_slice %103 {offsets = [0, 64], sizes = [1, 32], strides = [1, 1]} : vector<1x96xf32> to vector<1x32xf32>
    %123 = vector.extract_strided_slice %105 {offsets = [0, 64], sizes = [1, 32], strides = [1, 1]} : vector<1x96xf32> to vector<1x32xf32>
    %124 = arith.mulf %113, %123 : vector<1x32xf32>
    %125 = arith.addf %122, %124 : vector<1x32xf32>
    %126 = math.tanh %125 : vector<1x32xf32>
    %cst_38 = arith.constant 1.000000e+00 : f32
    %127 = vector.broadcast %cst_38 : f32 to vector<1x32xf32>
    %128 = arith.subf %127, %121 : vector<1x32xf32>
    %129 = arith.mulf %128, %126 : vector<1x32xf32>
    %130 = arith.mulf %121, %99 : vector<1x32xf32>
    %131 = arith.addf %129, %130 : vector<1x32xf32>
    %c3_39 = arith.constant 3 : index
    %c0_40 = arith.constant 0 : index
    %132 = vector.load %arg6[%c3_39, %c0_40] : memref<8x32xf32, #tpu.memory_space<vmem>>, vector<1x32xf32>
    tpu.vector_store %arg6[%c3_39, %c0_40], %131 {strides = array<i32>} : memref<8x32xf32, #tpu.memory_space<vmem>>, vector<1x32xf32>,
    %c4 = arith.constant 4 : index
    %c0_41 = arith.constant 0 : index
    %133 = vector.load %arg0[%c4, %c0_41] : memref<8x32xf32, #tpu.memory_space<vmem>>, vector<1x32xf32>
    %cst_42 = arith.constant dense<0.000000e+00> : vector<1x96xf32>
    %134 = tpu.matmul %133, %0, %cst_42 {dimension_numbers = #tpu.dot_dimension_numbers<[1], [0], [0], [1], [0, 0, 1, 1], [], []>} : vector<1x32xf32>, vector<32x96xf32>, vector<1x96xf32> -> vector<1x96xf32>
    %135 = arith.addf %134, %2 : vector<1x96xf32>
    %cst_43 = arith.constant dense<0.000000e+00> : vector<1x96xf32>
    %136 = tpu.matmul %131, %1, %cst_43 {dimension_numbers = #tpu.dot_dimension_numbers<[1], [0], [0], [1], [0, 0, 1, 1], [], []>} : vector<1x32xf32>, vector<32x96xf32>, vector<1x96xf32> -> vector<1x96xf32>
    %137 = arith.addf %136, %3 : vector<1x96xf32>
    %138 = vector.extract_strided_slice %135 {offsets = [0, 0], sizes = [1, 32], strides = [1, 1]} : vector<1x96xf32> to vector<1x32xf32>
    %139 = vector.extract_strided_slice %137 {offsets = [0, 0], sizes = [1, 32], strides = [1, 1]} : vector<1x96xf32> to vector<1x32xf32>
    %140 = arith.addf %138, %139 : vector<1x32xf32>
    %141 = arith.negf %140 : vector<1x32xf32>
    %142 = math.exp %141 : vector<1x32xf32>
    %cst_44 = arith.constant 1.000000e+00 : f32
    %143 = vector.broadcast %cst_44 : f32 to vector<1x32xf32>
    %144 = arith.addf %143, %142 : vector<1x32xf32>
    %145 = arith.divf %143, %144 : vector<1x32xf32>
    %146 = vector.extract_strided_slice %135 {offsets = [0, 32], sizes = [1, 32], strides = [1, 1]} : vector<1x96xf32> to vector<1x32xf32>
    %147 = vector.extract_strided_slice %137 {offsets = [0, 32], sizes = [1, 32], strides = [1, 1]} : vector<1x96xf32> to vector<1x32xf32>
    %148 = arith.addf %146, %147 : vector<1x32xf32>
    %149 = arith.negf %148 : vector<1x32xf32>
    %150 = math.exp %149 : vector<1x32xf32>
    %cst_45 = arith.constant 1.000000e+00 : f32
    %151 = vector.broadcast %cst_45 : f32 to vector<1x32xf32>
    %152 = arith.addf %151, %150 : vector<1x32xf32>
    %153 = arith.divf %151, %152 : vector<1x32xf32>
    %154 = vector.extract_strided_slice %135 {offsets = [0, 64], sizes = [1, 32], strides = [1, 1]} : vector<1x96xf32> to vector<1x32xf32>
    %155 = vector.extract_strided_slice %137 {offsets = [0, 64], sizes = [1, 32], strides = [1, 1]} : vector<1x96xf32> to vector<1x32xf32>
    %156 = arith.mulf %145, %155 : vector<1x32xf32>
    %157 = arith.addf %154, %156 : vector<1x32xf32>
    %158 = math.tanh %157 : vector<1x32xf32>
    %cst_46 = arith.constant 1.000000e+00 : f32
    %159 = vector.broadcast %cst_46 : f32 to vector<1x32xf32>
    %160 = arith.subf %159, %153 : vector<1x32xf32>
    %161 = arith.mulf %160, %158 : vector<1x32xf32>
    %162 = arith.mulf %153, %131 : vector<1x32xf32>
    %163 = arith.addf %161, %162 : vector<1x32xf32>
    %c4_47 = arith.constant 4 : index
    %c0_48 = arith.constant 0 : index
    %164 = vector.load %arg6[%c4_47, %c0_48] : memref<8x32xf32, #tpu.memory_space<vmem>>, vector<1x32xf32>
    tpu.vector_store %arg6[%c4_47, %c0_48], %163 {strides = array<i32>} : memref<8x32xf32, #tpu.memory_space<vmem>>, vector<1x32xf32>,
    %c5 = arith.constant 5 : index
    %c0_49 = arith.constant 0 : index
    %165 = vector.load %arg0[%c5, %c0_49] : memref<8x32xf32, #tpu.memory_space<vmem>>, vector<1x32xf32>
    %cst_50 = arith.constant dense<0.000000e+00> : vector<1x96xf32>
    %166 = tpu.matmul %165, %0, %cst_50 {dimension_numbers = #tpu.dot_dimension_numbers<[1], [0], [0], [1], [0, 0, 1, 1], [], []>} : vector<1x32xf32>, vector<32x96xf32>, vector<1x96xf32> -> vector<1x96xf32>
    %167 = arith.addf %166, %2 : vector<1x96xf32>
    %cst_51 = arith.constant dense<0.000000e+00> : vector<1x96xf32>
    %168 = tpu.matmul %163, %1, %cst_51 {dimension_numbers = #tpu.dot_dimension_numbers<[1], [0], [0], [1], [0, 0, 1, 1], [], []>} : vector<1x32xf32>, vector<32x96xf32>, vector<1x96xf32> -> vector<1x96xf32>
    %169 = arith.addf %168, %3 : vector<1x96xf32>
    %170 = vector.extract_strided_slice %167 {offsets = [0, 0], sizes = [1, 32], strides = [1, 1]} : vector<1x96xf32> to vector<1x32xf32>
    %171 = vector.extract_strided_slice %169 {offsets = [0, 0], sizes = [1, 32], strides = [1, 1]} : vector<1x96xf32> to vector<1x32xf32>
    %172 = arith.addf %170, %171 : vector<1x32xf32>
    %173 = arith.negf %172 : vector<1x32xf32>
    %174 = math.exp %173 : vector<1x32xf32>
    %cst_52 = arith.constant 1.000000e+00 : f32
    %175 = vector.broadcast %cst_52 : f32 to vector<1x32xf32>
    %176 = arith.addf %175, %174 : vector<1x32xf32>
    %177 = arith.divf %175, %176 : vector<1x32xf32>
    %178 = vector.extract_strided_slice %167 {offsets = [0, 32], sizes = [1, 32], strides = [1, 1]} : vector<1x96xf32> to vector<1x32xf32>
    %179 = vector.extract_strided_slice %169 {offsets = [0, 32], sizes = [1, 32], strides = [1, 1]} : vector<1x96xf32> to vector<1x32xf32>
    %180 = arith.addf %178, %179 : vector<1x32xf32>
    %181 = arith.negf %180 : vector<1x32xf32>
    %182 = math.exp %181 : vector<1x32xf32>
    %cst_53 = arith.constant 1.000000e+00 : f32
    %183 = vector.broadcast %cst_53 : f32 to vector<1x32xf32>
    %184 = arith.addf %183, %182 : vector<1x32xf32>
    %185 = arith.divf %183, %184 : vector<1x32xf32>
    %186 = vector.extract_strided_slice %167 {offsets = [0, 64], sizes = [1, 32], strides = [1, 1]} : vector<1x96xf32> to vector<1x32xf32>
    %187 = vector.extract_strided_slice %169 {offsets = [0, 64], sizes = [1, 32], strides = [1, 1]} : vector<1x96xf32> to vector<1x32xf32>
    %188 = arith.mulf %177, %187 : vector<1x32xf32>
    %189 = arith.addf %186, %188 : vector<1x32xf32>
    %190 = math.tanh %189 : vector<1x32xf32>
    %cst_54 = arith.constant 1.000000e+00 : f32
    %191 = vector.broadcast %cst_54 : f32 to vector<1x32xf32>
    %192 = arith.subf %191, %185 : vector<1x32xf32>
    %193 = arith.mulf %192, %190 : vector<1x32xf32>
    %194 = arith.mulf %185, %163 : vector<1x32xf32>
    %195 = arith.addf %193, %194 : vector<1x32xf32>
    %c5_55 = arith.constant 5 : index
    %c0_56 = arith.constant 0 : index
    %196 = vector.load %arg6[%c5_55, %c0_56] : memref<8x32xf32, #tpu.memory_space<vmem>>, vector<1x32xf32>
    tpu.vector_store %arg6[%c5_55, %c0_56], %195 {strides = array<i32>} : memref<8x32xf32, #tpu.memory_space<vmem>>, vector<1x32xf32>,
    %c6 = arith.constant 6 : index
    %c0_57 = arith.constant 0 : index
    %197 = vector.load %arg0[%c6, %c0_57] : memref<8x32xf32, #tpu.memory_space<vmem>>, vector<1x32xf32>
    %cst_58 = arith.constant dense<0.000000e+00> : vector<1x96xf32>
    %198 = tpu.matmul %197, %0, %cst_58 {dimension_numbers = #tpu.dot_dimension_numbers<[1], [0], [0], [1], [0, 0, 1, 1], [], []>} : vector<1x32xf32>, vector<32x96xf32>, vector<1x96xf32> -> vector<1x96xf32>
    %199 = arith.addf %198, %2 : vector<1x96xf32>
    %cst_59 = arith.constant dense<0.000000e+00> : vector<1x96xf32>
    %200 = tpu.matmul %195, %1, %cst_59 {dimension_numbers = #tpu.dot_dimension_numbers<[1], [0], [0], [1], [0, 0, 1, 1], [], []>} : vector<1x32xf32>, vector<32x96xf32>, vector<1x96xf32> -> vector<1x96xf32>
    %201 = arith.addf %200, %3 : vector<1x96xf32>
    %202 = vector.extract_strided_slice %199 {offsets = [0, 0], sizes = [1, 32], strides = [1, 1]} : vector<1x96xf32> to vector<1x32xf32>
    %203 = vector.extract_strided_slice %201 {offsets = [0, 0], sizes = [1, 32], strides = [1, 1]} : vector<1x96xf32> to vector<1x32xf32>
    %204 = arith.addf %202, %203 : vector<1x32xf32>
    %205 = arith.negf %204 : vector<1x32xf32>
    %206 = math.exp %205 : vector<1x32xf32>
    %cst_60 = arith.constant 1.000000e+00 : f32
    %207 = vector.broadcast %cst_60 : f32 to vector<1x32xf32>
    %208 = arith.addf %207, %206 : vector<1x32xf32>
    %209 = arith.divf %207, %208 : vector<1x32xf32>
    %210 = vector.extract_strided_slice %199 {offsets = [0, 32], sizes = [1, 32], strides = [1, 1]} : vector<1x96xf32> to vector<1x32xf32>
    %211 = vector.extract_strided_slice %201 {offsets = [0, 32], sizes = [1, 32], strides = [1, 1]} : vector<1x96xf32> to vector<1x32xf32>
    %212 = arith.addf %210, %211 : vector<1x32xf32>
    %213 = arith.negf %212 : vector<1x32xf32>
    %214 = math.exp %213 : vector<1x32xf32>
    %cst_61 = arith.constant 1.000000e+00 : f32
    %215 = vector.broadcast %cst_61 : f32 to vector<1x32xf32>
    %216 = arith.addf %215, %214 : vector<1x32xf32>
    %217 = arith.divf %215, %216 : vector<1x32xf32>
    %218 = vector.extract_strided_slice %199 {offsets = [0, 64], sizes = [1, 32], strides = [1, 1]} : vector<1x96xf32> to vector<1x32xf32>
    %219 = vector.extract_strided_slice %201 {offsets = [0, 64], sizes = [1, 32], strides = [1, 1]} : vector<1x96xf32> to vector<1x32xf32>
    %220 = arith.mulf %209, %219 : vector<1x32xf32>
    %221 = arith.addf %218, %220 : vector<1x32xf32>
    %222 = math.tanh %221 : vector<1x32xf32>
    %cst_62 = arith.constant 1.000000e+00 : f32
    %223 = vector.broadcast %cst_62 : f32 to vector<1x32xf32>
    %224 = arith.subf %223, %217 : vector<1x32xf32>
    %225 = arith.mulf %224, %222 : vector<1x32xf32>
    %226 = arith.mulf %217, %195 : vector<1x32xf32>
    %227 = arith.addf %225, %226 : vector<1x32xf32>
    %c6_63 = arith.constant 6 : index
    %c0_64 = arith.constant 0 : index
    %228 = vector.load %arg6[%c6_63, %c0_64] : memref<8x32xf32, #tpu.memory_space<vmem>>, vector<1x32xf32>
    tpu.vector_store %arg6[%c6_63, %c0_64], %227 {strides = array<i32>} : memref<8x32xf32, #tpu.memory_space<vmem>>, vector<1x32xf32>,
    %c7 = arith.constant 7 : index
    %c0_65 = arith.constant 0 : index
    %229 = vector.load %arg0[%c7, %c0_65] : memref<8x32xf32, #tpu.memory_space<vmem>>, vector<1x32xf32>
    %cst_66 = arith.constant dense<0.000000e+00> : vector<1x96xf32>
    %230 = tpu.matmul %229, %0, %cst_66 {dimension_numbers = #tpu.dot_dimension_numbers<[1], [0], [0], [1], [0, 0, 1, 1], [], []>} : vector<1x32xf32>, vector<32x96xf32>, vector<1x96xf32> -> vector<1x96xf32>
    %231 = arith.addf %230, %2 : vector<1x96xf32>
    %cst_67 = arith.constant dense<0.000000e+00> : vector<1x96xf32>
    %232 = tpu.matmul %227, %1, %cst_67 {dimension_numbers = #tpu.dot_dimension_numbers<[1], [0], [0], [1], [0, 0, 1, 1], [], []>} : vector<1x32xf32>, vector<32x96xf32>, vector<1x96xf32> -> vector<1x96xf32>
    %233 = arith.addf %232, %3 : vector<1x96xf32>
    %234 = vector.extract_strided_slice %231 {offsets = [0, 0], sizes = [1, 32], strides = [1, 1]} : vector<1x96xf32> to vector<1x32xf32>
    %235 = vector.extract_strided_slice %233 {offsets = [0, 0], sizes = [1, 32], strides = [1, 1]} : vector<1x96xf32> to vector<1x32xf32>
    %236 = arith.addf %234, %235 : vector<1x32xf32>
    %237 = arith.negf %236 : vector<1x32xf32>
    %238 = math.exp %237 : vector<1x32xf32>
    %cst_68 = arith.constant 1.000000e+00 : f32
    %239 = vector.broadcast %cst_68 : f32 to vector<1x32xf32>
    %240 = arith.addf %239, %238 : vector<1x32xf32>
    %241 = arith.divf %239, %240 : vector<1x32xf32>
    %242 = vector.extract_strided_slice %231 {offsets = [0, 32], sizes = [1, 32], strides = [1, 1]} : vector<1x96xf32> to vector<1x32xf32>
    %243 = vector.extract_strided_slice %233 {offsets = [0, 32], sizes = [1, 32], strides = [1, 1]} : vector<1x96xf32> to vector<1x32xf32>
    %244 = arith.addf %242, %243 : vector<1x32xf32>
    %245 = arith.negf %244 : vector<1x32xf32>
    %246 = math.exp %245 : vector<1x32xf32>
    %cst_69 = arith.constant 1.000000e+00 : f32
    %247 = vector.broadcast %cst_69 : f32 to vector<1x32xf32>
    %248 = arith.addf %247, %246 : vector<1x32xf32>
    %249 = arith.divf %247, %248 : vector<1x32xf32>
    %250 = vector.extract_strided_slice %231 {offsets = [0, 64], sizes = [1, 32], strides = [1, 1]} : vector<1x96xf32> to vector<1x32xf32>
    %251 = vector.extract_strided_slice %233 {offsets = [0, 64], sizes = [1, 32], strides = [1, 1]} : vector<1x96xf32> to vector<1x32xf32>
    %252 = arith.mulf %241, %251 : vector<1x32xf32>
    %253 = arith.addf %250, %252 : vector<1x32xf32>
    %254 = math.tanh %253 : vector<1x32xf32>
    %cst_70 = arith.constant 1.000000e+00 : f32
    %255 = vector.broadcast %cst_70 : f32 to vector<1x32xf32>
    %256 = arith.subf %255, %249 : vector<1x32xf32>
    %257 = arith.mulf %256, %254 : vector<1x32xf32>
    %258 = arith.mulf %249, %227 : vector<1x32xf32>
    %259 = arith.addf %257, %258 : vector<1x32xf32>
    %c7_71 = arith.constant 7 : index
    %c0_72 = arith.constant 0 : index
    %260 = vector.load %arg6[%c7_71, %c0_72] : memref<8x32xf32, #tpu.memory_space<vmem>>, vector<1x32xf32>
    tpu.vector_store %arg6[%c7_71, %c0_72], %259 {strides = array<i32>} : memref<8x32xf32, #tpu.memory_space<vmem>>, vector<1x32xf32>,
    return
  }
}

</mosaic_0001>

<bundles_post_ra>
// kernel: encoder_rnn_sequence.1
= control target key start
LH: loop header
LB: loop body
LE: loop exit
PB: predicated region body
PF: predicated region fallthrough
CT: control target
= control target key end

     0   :  { %v1797_v0 = vmov 0.0   ;;  %vm35_vm0 = vcmask 261120   ;;  %vm1798_vm1 = vmmov 0   ;;  %s1799_s16 = smov 64   ;;  %v206_v28 = vlaneseq  ;;  %s2170_s2 = inlined_call_operand.vmem [shape: f32[32,96], index: 2, kind: input, shape index: {}]   ;;  %s2171_s3 = inlined_call_operand.vmem [shape: f32[32,96], index: 3, kind: input, shape index: {}]   ;;  %s2172_s0 = inlined_call_operand.vmem [shape: f32[8,32], index: 0, kind: input, shape index: {}]   ;;  %s2173_s1 = inlined_call_operand.vmem [shape: f32[1,32], index: 1, kind: input, shape index: {}]   ;;  %s2174_s5 = inlined_call_operand.vmem [shape: f32[1,96], index: 5, kind: input, shape index: {}]   ;;  %s2175_s4 = inlined_call_operand.vmem [shape: f32[1,96], index: 4, kind: input, shape index: {}]   ;;  %s2176_s6 = inlined_call_operand.vmem [shape: f32[8,32], index: 6, kind: output, shape index: {}]  }
   0x1   :  { %1568 = vmatprep.subr.mxu0 %v1797_v0  ;;  %1579 = vmatprep.subr.mxu1 %v1797_v0  ;;  %v1842_v1 = vld [vmem:[%s2170_s2 + $0x18] sm:$0xff]  ;;  %v1852_v3 = vld [vmem:[%s2170_s2 + $0x10] sm:$0xff]  ;;  %v1866_v5 = vld [vmem:[%s2170_s2 + $0x8] sm:$0xff]  ;;  %vm219_vm2 = vcmask 253952  }
   0x2   :  { %v1847_v2 = vld [vmem:[%s2171_s3 + $0x18] sm:$0xff]  ;;  %1569 = vmatpush3.msra.mxu0 %v1842_v1  ;;  %v1859_v4 = vld [vmem:[%s2171_s3 + $0x10] sm:$0xff]  ;;  %v1871_v6 = vld [vmem:[%s2171_s3 + $0x8] sm:$0xff]  ;;  %1576 = vmatprep.mubr.msk.f32.mxu0 %vm1798_vm1, %v1797_v0  ;;  %v207_v29 = vshrl.u32 %v206_v28, 7 }
   0x3   :  { %1580 = vmatpush3.msra.mxu1 %v1847_v2  ;;  %1570 = vmatprep.subr.mxu0 %v1797_v0  ;;  %v1880_v7 = vld [vmem:[%s2170_s2] sm:$0xff] }
   0x4   :  { %1581 = vmatprep.subr.mxu1 %v1797_v0  ;;  %1571 = vmatpush3.msra.mxu0 %v1852_v3  ;;  %v1887_v8 = vld [vmem:[%s2171_s3] sm:$0xff]  ;;  %v208_v30 = vsub.s32 0, %v207_v29 }
   0x5   :  { %1582 = vmatpush3.msra.mxu1 %v1859_v4  ;;  %1572 = vmatprep.subr.mxu0 %v1797_v0  ;;  %v34_v9 = vld [vmem:[%s2172_s0] sm:$0x1]  ;;  %v221_v33 = vld [vmem:[%s2172_s0 + $0x1] sm:$0x1]  ;;  %v398_v57 = vld [vmem:[%s2172_s0 + $0x2] sm:$0x1] }
   0x6   :  { %1583 = vmatprep.subr.mxu1 %v1797_v0  ;;  %1573 = vmatpush3.msra.mxu0 %v1866_v5  ;;  %v33_v10 = vld [vmem:[%s2173_s1] sm:$0x1] }
   0x7   :  { %1584 = vmatpush3.msra.mxu1 %v1871_v6  ;;  %1574 = vmatprep.subr.mxu0 %v1797_v0  ;;  %v1930_v11 = vld [vmem:[%s2174_s5] sm:$0x1]  ;;  %v209_v32 = vrot.slane %v33_v10, %v208_v30  ;;  %s1801_s5 = smov 32  }
   0x8   :  { %1585 = vmatprep.subr.mxu1 %v1797_v0  ;;  %1575 = vmatpush3.msra.mxu0 %v1880_v7  ;;  %v1937_v17 = vld [vmem:[%s2175_s4] sm:$0x1]  ;;  %s1800_s4 = smov 96  }
   0x9   :  { %1586 = vmatpush3.msra.mxu1 %v1887_v8  ;;  %1587 = vmatprep.mubr.msk.f32.mxu1 %vm1798_vm1, %v1797_v0 }
   0xa   :  { %1577 = vmatmul.mubr.msk.f32.vlgmr.msra.gmra.mxu0 %vm35_vm0, %v34_v9  ;;  %1588 = vmatmul.mubr.msk.f32.vlgmr.msra.gmra.mxu1 %vm35_vm0, %v33_v10 }
   0xb   :  { %1590 = vmatprep.subr.mxu0 %v1797_v0  ;;  %1601 = vmatprep.subr.mxu1 %v1797_v0 }
   0xc   :  { %1591 = vmatpush3.msra.mxu0 %v1842_v1  ;;  %1602 = vmatpush3.msra.mxu1 %v1847_v2 }
   0xd   :  { %1592 = vmatprep.subr.mxu0 %v1797_v0  ;;  %1603 = vmatprep.subr.mxu1 %v1797_v0 }
   0xe   :  { %1593 = vmatpush3.msra.mxu0 %v1852_v3  ;;  %1604 = vmatpush3.msra.mxu1 %v1859_v4 }
   0xf   :  { %1594 = vmatprep.subr.mxu0 %v1797_v0  ;;  %1605 = vmatprep.subr.mxu1 %v1797_v0 }
  0x10   :  { %1595 = vmatpush3.msra.mxu0 %v1866_v5  ;;  %1606 = vmatpush3.msra.mxu1 %v1871_v6 }
  0x11   :  { %1596 = vmatprep.subr.mxu0 %v1797_v0  ;;  %1607 = vmatprep.subr.mxu1 %v1797_v0 }
  0x12   :  { %1597 = vmatpush3.msra.mxu0 %v1880_v7  ;;  %1598 = vmatprep.mubr.msk.f32.mxu0 %vm1798_vm1, %v1797_v0 }
  0x13   :  { %1608 = vmatpush3.msra.mxu1 %v1887_v8  ;;  %1609 = vmatprep.mubr.msk.f32.mxu1 %vm1798_vm1, %v1797_v0 }
  0x14   :  { %1612 = vmatprep.subr.mxu0 %v1797_v0  ;;  %1623 = vmatprep.subr.mxu1 %v1797_v0 }
  0x15   :  { %1599 = vmatmul.mubr.msk.f32.vlgmr.msra.gmra.mxu0 %vm35_vm0, %v221_v33 }
  0x16   :  { %1613 = vmatpush3.msra.mxu0 %v1842_v1  ;;  %1620 = vmatprep.mubr.msk.f32.mxu0 %vm1798_vm1, %v1797_v0 }
  0x17   :  { %1614 = vmatprep.subr.mxu0 %v1797_v0 }
  0x18   :  { %1615 = vmatpush3.msra.mxu0 %v1852_v3 }
  0x19   :  { %1616 = vmatprep.subr.mxu0 %v1797_v0 }
  0x1a   :  { %1617 = vmatpush3.msra.mxu0 %v1866_v5 }
  0x1b   :  { %1618 = vmatprep.subr.mxu0 %v1797_v0 }
  0x1c   :  { %1619 = vmatpush3.msra.mxu0 %v1880_v7 }
  0x1d   :  { %1634 = vmatprep.subr.mxu0 %v1797_v0  ;;  %1621 = vmatmul.mubr.msk.f32.vlgmr.msra.gmra.mxu0 %vm35_vm0, %v398_v57 }
  0x1e   :  { %1635 = vmatpush3.msra.mxu0 %v1842_v1  ;;  %1642 = vmatprep.mubr.msk.f32.mxu0 %vm1798_vm1, %v1797_v0 }
  0x1f   :  { %1636 = vmatprep.subr.mxu0 %v1797_v0 }
  0x20   :  { %1637 = vmatpush3.msra.mxu0 %v1852_v3 }
  0x21   :  { %1638 = vmatprep.subr.mxu0 %v1797_v0 }
  0x22   :  { %1639 = vmatpush3.msra.mxu0 %v1866_v5 }
  0x23   :  { %1640 = vmatprep.subr.mxu0 %v1797_v0 }
  0x24   :  { %1641 = vmatpush3.msra.mxu0 %v1880_v7 }
  0x25   :  { %1656 = vmatprep.subr.mxu0 %v1797_v0 }
  0xca   :  { %v105_v12 = vpop.f32.mrf.mxu0  ;;  %v178_v13 = vpop.f32.mrf.mxu1 }
  0xcb   :  { %v179_v14 = vadd.f32 %v178_v13, %v1930_v11  ;;  %v106_v18 = vadd.f32 %v105_v12, %v1937_v17 }
  0xcc   :  { %v1589_v15 = vpop.f32.mrf.mxu1  ;;  %v1578_v16 = vpop.f32.mrf.mxu0 }
  0xcd   :  { %190 = vrot.lane.b32.xlu0 %v179_v14, %s1799_s16  ;;  %v182_v19 = vadd.f32 %v179_v14, %v106_v18 }
  0xcf   :  { %v1466_v20 = vmul.f32 -1.442695, %v182_v19 }
  0xd1   :  { %1749 = vpow2.f32 %v1466_v20 }
  0xd5   :  { %v291_v41 = vpop.f32.mrf.mxu0 }
  0xd6   :  { %v292_v46 = vadd.f32 %v291_v41, %v1937_v17 }
  0xd7   :  { %v1600_v42 = vpop.f32.mrf.mxu0 }
  0xdd   :  { %v468_v9 = vpop.f32.mrf.mxu0 }
  0xde   :  { %v1750_v21 = vpop.eup %1749  ;;  %v469_v15 = vadd.f32 %v468_v9, %v1937_v17 }
  0xdf   :  { %v186_v22 = vadd.f32 1.0, %v1750_v21  ;;  %v1622_v10 = vpop.f32.mrf.mxu0 }
  0xe1   :  { %1751 = vrcp.f32 %v186_v22 }
  0xee   :  { %v1752_v23 = vpop.eup %1751 }
  0xef   :  { %v200_v35 = vsub.f32 1.0, %v1752_v23 }
 0x13f   :  { %v191_v24 = vpop.permute.xlu0 %190 }
 0x140   :  { %v193_v25 = vmul.f32 %v1752_v23, %v191_v24 }
 0x142   :  { %195 = vrot.lane.b32.xlu0 %v193_v25, %s1799_s16 }
 0x1b4   :  { %v196_v26 = vpop.permute.xlu0 %195 }
 0x1b5   :  { %v198_v27 = vadd.f32 %v196_v26, %v106_v18 }
 0x1b7   :  { %1753 = vtanh.f32 %v198_v27  ;;  %v575_v27 = vld [vmem:[%s2172_s0 + $0x3] sm:$0x1] }
 0x1b8   :  { %1643 = vmatmul.mubr.msk.f32.vlgmr.msra.gmra.mxu0 %vm35_vm0, %v575_v27 }
 0x1b9   :  { %1657 = vmatpush3.msra.mxu0 %v1842_v1  ;;  %1664 = vmatprep.mubr.msk.f32.mxu0 %vm1798_vm1, %v1797_v0 }
 0x1ba   :  { %1658 = vmatprep.subr.mxu0 %v1797_v0 }
 0x1bb   :  { %1659 = vmatpush3.msra.mxu0 %v1852_v3 }
 0x1bc   :  { %1660 = vmatprep.subr.mxu0 %v1797_v0 }
 0x1bd   :  { %1661 = vmatpush3.msra.mxu0 %v1866_v5 }
 0x1be   :  { %1662 = vmatprep.subr.mxu0 %v1797_v0 }
 0x1bf   :  { %1663 = vmatpush3.msra.mxu0 %v1880_v7 }
 0x1c0   :  { %1678 = vmatprep.subr.mxu0 %v1797_v0 }
 0x1c4   :  { %v1754_v31 = vpop.eup %1753 }
 0x1c5   :  { %202 = vrot.lane.b32.xlu1 %v1754_v31, %s1800_s4 }
 0x1c9   :  { %210 = vrot.lane.b32.xlu1 %v209_v32, %s1801_s5 }
 0x237   :  { %v203_v34 = vpop.permute.xlu1 %202 }
 0x238   :  { %v205_v37 = vmul.f32 %v203_v34, %v200_v35 }
 0x23b   :  { %v211_v36 = vpop.permute.xlu1 %210 }
 0x23c   :  { %v213_v38 = vmul.f32 %v1752_v23, %v211_v36 }
 0x23e   :  { %v214_v39 = vadd.f32 %v213_v38, %v205_v37 }
 0x240   :  { %216 = vrot.lane.b32.xlu0 %v214_v39, %s1800_s4 }
 0x278   :  { %v645_v34 = vpop.f32.mrf.mxu0 }
 0x27a   :  { %v1644_v35 = vpop.f32.mrf.mxu0 }
 0x2b2   :  { %v217_v40 = vpop.permute.xlu0 %216 }
 0x2b3   :  { %220 = vst.msk [vmem:[%s2176_s6] sm:$0x1] %vm219_vm2, %v217_v40  ;;  %1610 = vmatmul.mubr.msk.f32.vlgmr.msra.gmra.mxu1 %vm35_vm0, %v217_v40 }
 0x2b4   :  { %1624 = vmatpush3.msra.mxu1 %v1847_v2  ;;  %1631 = vmatprep.mubr.msk.f32.mxu1 %vm1798_vm1, %v1797_v0 }
 0x2b5   :  { %1625 = vmatprep.subr.mxu1 %v1797_v0 }
 0x2b6   :  { %1626 = vmatpush3.msra.mxu1 %v1859_v4 }
 0x2b7   :  { %1627 = vmatprep.subr.mxu1 %v1797_v0 }
 0x2b8   :  { %1628 = vmatpush3.msra.mxu1 %v1871_v6 }
 0x2b9   :  { %1629 = vmatprep.subr.mxu1 %v1797_v0 }
 0x2ba   :  { %1630 = vmatpush3.msra.mxu1 %v1887_v8 }
 0x2bb   :  { %1645 = vmatprep.subr.mxu1 %v1797_v0 }
 0x373   :  { %v363_v43 = vpop.f32.mrf.mxu1 }
 0x374   :  { %v364_v44 = vadd.f32 %v363_v43, %v1930_v11 }
 0x375   :  { %v1611_v45 = vpop.f32.mrf.mxu1 }
 0x376   :  { %375 = vrot.lane.b32.xlu1 %v364_v44, %s1799_s16  ;;  %v367_v47 = vadd.f32 %v364_v44, %v292_v46 }
 0x378   :  { %v1469_v48 = vmul.f32 -1.442695, %v367_v47 }
 0x37a   :  { %1755 = vpow2.f32 %v1469_v48 }
 0x387   :  { %v1756_v49 = vpop.eup %1755 }
 0x388   :  { %v371_v50 = vadd.f32 1.0, %v1756_v49 }
 0x38a   :  { %1757 = vrcp.f32 %v371_v50  ;;  %v752_v50 = vld [vmem:[%s2172_s0 + $0x4] sm:$0x1] }
 0x38b   :  { %1665 = vmatmul.mubr.msk.f32.vlgmr.msra.gmra.mxu0 %vm35_vm0, %v752_v50 }
 0x38c   :  { %1679 = vmatpush3.msra.mxu0 %v1842_v1  ;;  %1686 = vmatprep.mubr.msk.f32.mxu0 %vm1798_vm1, %v1797_v0 }
 0x38d   :  { %1680 = vmatprep.subr.mxu0 %v1797_v0 }
 0x38e   :  { %1681 = vmatpush3.msra.mxu0 %v1852_v3 }
 0x38f   :  { %1682 = vmatprep.subr.mxu0 %v1797_v0 }
 0x390   :  { %1683 = vmatpush3.msra.mxu0 %v1866_v5 }
 0x391   :  { %1684 = vmatprep.subr.mxu0 %v1797_v0 }
 0x392   :  { %1685 = vmatpush3.msra.mxu0 %v1880_v7 }
 0x393   :  { %1700 = vmatprep.subr.mxu0 %v1797_v0 }
 0x397   :  { %v1758_v51 = vpop.eup %1757 }
 0x398   :  { %v385_v58 = vsub.f32 1.0, %v1758_v51  ;;  %v391_v60 = vmul.f32 %v1758_v51, %v214_v39  ;;  %v646_v39 = vadd.f32 %v645_v34, %v1937_v17 }
 0x3e8   :  { %v376_v52 = vpop.permute.xlu1 %375 }
 0x3e9   :  { %v378_v53 = vmul.f32 %v1758_v51, %v376_v52 }
 0x3eb   :  { %380 = vrot.lane.b32.xlu0 %v378_v53, %s1799_s16 }
 0x44b   :  { %v822_v57 = vpop.f32.mrf.mxu0 }
 0x45d   :  { %v381_v54 = vpop.permute.xlu0 %380 }
 0x45e   :  { %v383_v55 = vadd.f32 %v381_v54, %v292_v46 }
 0x460   :  { %1759 = vtanh.f32 %v383_v55 }
 0x46d   :  { %v1760_v56 = vpop.eup %1759 }
 0x46e   :  { %387 = vrot.lane.b32.xlu1 %v1760_v56, %s1800_s4 }
 0x4e0   :  { %v388_v59 = vpop.permute.xlu1 %387 }
 0x4e1   :  { %v390_v61 = vmul.f32 %v388_v59, %v385_v58  ;;  %v1666_v58 = vpop.f32.mrf.mxu0 }
 0x4e3   :  { %v392_v62 = vadd.f32 %v391_v60, %v390_v61 }
 0x4e5   :  { %394 = vrot.lane.b32.xlu0 %v392_v62, %s1800_s4 }
 0x557   :  { %v395_v63 = vpop.permute.xlu0 %394 }
 0x558   :  { %397 = vst.msk [vmem:[%s2176_s6 + $0x1] sm:$0x1] %vm219_vm2, %v395_v63  ;;  %1632 = vmatmul.mubr.msk.f32.vlgmr.msra.gmra.mxu1 %vm35_vm0, %v395_v63 }
 0x559   :  { %1646 = vmatpush3.msra.mxu1 %v1847_v2  ;;  %1653 = vmatprep.mubr.msk.f32.mxu1 %vm1798_vm1, %v1797_v0 }
 0x55a   :  { %1647 = vmatprep.subr.mxu1 %v1797_v0 }
 0x55b   :  { %1648 = vmatpush3.msra.mxu1 %v1859_v4 }
 0x55c   :  { %1649 = vmatprep.subr.mxu1 %v1797_v0 }
 0x55d   :  { %1650 = vmatpush3.msra.mxu1 %v1871_v6 }
 0x55e   :  { %1651 = vmatprep.subr.mxu1 %v1797_v0 }
 0x55f   :  { %1652 = vmatpush3.msra.mxu1 %v1887_v8 }
 0x560   :  { %1667 = vmatprep.subr.mxu1 %v1797_v0 }
 0x618   :  { %v540_v12 = vpop.f32.mrf.mxu1 }
 0x619   :  { %v541_v13 = vadd.f32 %v540_v12, %v1930_v11 }
 0x61a   :  { %v1633_v14 = vpop.f32.mrf.mxu1 }
 0x61b   :  { %552 = vrot.lane.b32.xlu1 %v541_v13, %s1799_s16  ;;  %v544_v16 = vadd.f32 %v541_v13, %v469_v15 }
 0x61d   :  { %v1472_v18 = vmul.f32 -1.442695, %v544_v16 }
 0x61f   :  { %1761 = vpow2.f32 %v1472_v18 }
 0x62c   :  { %v1762_v19 = vpop.eup %1761 }
 0x62d   :  { %v548_v20 = vadd.f32 1.0, %v1762_v19 }
 0x62f   :  { %1763 = vrcp.f32 %v548_v20  ;;  %v929_v20 = vld [vmem:[%s2172_s0 + $0x5] sm:$0x1] }
 0x630   :  { %1687 = vmatmul.mubr.msk.f32.vlgmr.msra.gmra.mxu0 %vm35_vm0, %v929_v20 }
 0x631   :  { %1701 = vmatpush3.msra.mxu0 %v1842_v1  ;;  %1708 = vmatprep.mubr.msk.f32.mxu0 %vm1798_vm1, %v1797_v0 }
 0x632   :  { %1702 = vmatprep.subr.mxu0 %v1797_v0 }
 0x633   :  { %1703 = vmatpush3.msra.mxu0 %v1852_v3 }
 0x634   :  { %1704 = vmatprep.subr.mxu0 %v1797_v0 }
 0x635   :  { %1705 = vmatpush3.msra.mxu0 %v1866_v5 }
 0x636   :  { %1706 = vmatprep.subr.mxu0 %v1797_v0 }
 0x637   :  { %1707 = vmatpush3.msra.mxu0 %v1880_v7 }
 0x638   :  { %1722 = vmatprep.subr.mxu0 %v1797_v0 }
 0x63c   :  { %v1764_v21 = vpop.eup %1763 }
 0x63d   :  { %v562_v28 = vsub.f32 1.0, %v1764_v21  ;;  %v568_v30 = vmul.f32 %v1764_v21, %v392_v62  ;;  %v823_v62 = vadd.f32 %v822_v57, %v1937_v17  ;;  %v1283_v57 = vld [vmem:[%s2172_s0 + $0x7] sm:$0x1] }
 0x68d   :  { %v553_v22 = vpop.permute.xlu1 %552 }
 0x68e   :  { %v555_v23 = vmul.f32 %v1764_v21, %v553_v22 }
 0x690   :  { %557 = vrot.lane.b32.xlu0 %v555_v23, %s1799_s16 }
 0x6f0   :  { %v999_v27 = vpop.f32.mrf.mxu0 }
 0x702   :  { %v558_v24 = vpop.permute.xlu0 %557 }
 0x703   :  { %v560_v25 = vadd.f32 %v558_v24, %v469_v15 }
 0x705   :  { %1765 = vtanh.f32 %v560_v25 }
 0x712   :  { %v1766_v26 = vpop.eup %1765 }
 0x713   :  { %564 = vrot.lane.b32.xlu1 %v1766_v26, %s1800_s4 }
 0x785   :  { %v565_v29 = vpop.permute.xlu1 %564 }
 0x786   :  { %v567_v31 = vmul.f32 %v565_v29, %v562_v28  ;;  %v1688_v28 = vpop.f32.mrf.mxu0 }
 0x788   :  { %v569_v32 = vadd.f32 %v568_v30, %v567_v31 }
 0x78a   :  { %571 = vrot.lane.b32.xlu0 %v569_v32, %s1800_s4 }
 0x7fc   :  { %v572_v33 = vpop.permute.xlu0 %571 }
 0x7fd   :  { %574 = vst.msk [vmem:[%s2176_s6 + $0x2] sm:$0x1] %vm219_vm2, %v572_v33  ;;  %1654 = vmatmul.mubr.msk.f32.vlgmr.msra.gmra.mxu1 %vm35_vm0, %v572_v33 }
 0x7fe   :  { %1668 = vmatpush3.msra.mxu1 %v1847_v2  ;;  %1675 = vmatprep.mubr.msk.f32.mxu1 %vm1798_vm1, %v1797_v0 }
 0x7ff   :  { %1669 = vmatprep.subr.mxu1 %v1797_v0 }
 0x800   :  { %1670 = vmatpush3.msra.mxu1 %v1859_v4 }
 0x801   :  { %1671 = vmatprep.subr.mxu1 %v1797_v0 }
 0x802   :  { %1672 = vmatpush3.msra.mxu1 %v1871_v6 }
 0x803   :  { %1673 = vmatprep.subr.mxu1 %v1797_v0 }
 0x804   :  { %1674 = vmatpush3.msra.mxu1 %v1887_v8 }
 0x805   :  { %1689 = vmatprep.subr.mxu1 %v1797_v0 }
 0x8bd   :  { %v717_v36 = vpop.f32.mrf.mxu1 }
 0x8be   :  { %v718_v37 = vadd.f32 %v717_v36, %v1930_v11 }
 0x8bf   :  { %v1655_v38 = vpop.f32.mrf.mxu1 }
 0x8c0   :  { %729 = vrot.lane.b32.xlu1 %v718_v37, %s1799_s16  ;;  %v721_v40 = vadd.f32 %v718_v37, %v646_v39 }
 0x8c2   :  { %v1475_v41 = vmul.f32 -1.442695, %v721_v40 }
 0x8c4   :  { %1767 = vpow2.f32 %v1475_v41 }
 0x8d1   :  { %v1768_v42 = vpop.eup %1767 }
 0x8d2   :  { %v725_v43 = vadd.f32 1.0, %v1768_v42 }
 0x8d4   :  { %1769 = vrcp.f32 %v725_v43  ;;  %v1106_v43 = vld [vmem:[%s2172_s0 + $0x6] sm:$0x1] }
 0x8d5   :  { %1709 = vmatmul.mubr.msk.f32.vlgmr.msra.gmra.mxu0 %vm35_vm0, %v1106_v43 }
 0x8d6   :  { %1723 = vmatpush3.msra.mxu0 %v1842_v1  ;;  %1730 = vmatprep.mubr.msk.f32.mxu0 %vm1798_vm1, %v1797_v0 }
 0x8d7   :  { %1724 = vmatprep.subr.mxu0 %v1797_v0 }
 0x8d8   :  { %1725 = vmatpush3.msra.mxu0 %v1852_v3 }
 0x8d9   :  { %1726 = vmatprep.subr.mxu0 %v1797_v0 }
 0x8da   :  { %1727 = vmatpush3.msra.mxu0 %v1866_v5 }
 0x8db   :  { %1728 = vmatprep.subr.mxu0 %v1797_v0 }
 0x8dc   :  { %1729 = vmatpush3.msra.mxu0 %v1880_v7 }
 0x8dd   :  { %1731 = vmatmul.mubr.msk.f32.vlgmr.msra.gmra.mxu0 %vm35_vm0, %v1283_v57 }
 0x8e1   :  { %v1770_v44 = vpop.eup %1769 }
 0x8e2   :  { %v739_v51 = vsub.f32 1.0, %v1770_v44  ;;  %v745_v53 = vmul.f32 %v1770_v44, %v569_v32  ;;  %v1000_v32 = vadd.f32 %v999_v27, %v1937_v17 }
 0x932   :  { %v730_v45 = vpop.permute.xlu1 %729 }
 0x933   :  { %v732_v46 = vmul.f32 %v1770_v44, %v730_v45 }
 0x935   :  { %734 = vrot.lane.b32.xlu0 %v732_v46, %s1799_s16 }
 0x995   :  { %v1176_v3 = vpop.f32.mrf.mxu0 }
 0x996   :  { %v1177_v50 = vadd.f32 %v1176_v3, %v1937_v17 }
 0x997   :  { %v1710_v5 = vpop.f32.mrf.mxu0 }
 0x9a7   :  { %v735_v47 = vpop.permute.xlu0 %734 }
 0x9a8   :  { %v737_v48 = vadd.f32 %v735_v47, %v646_v39 }
 0x9aa   :  { %1771 = vtanh.f32 %v737_v48 }
 0x9b7   :  { %v1772_v49 = vpop.eup %1771 }
 0x9b8   :  { %741 = vrot.lane.b32.xlu1 %v1772_v49, %s1800_s4 }
 0xa2a   :  { %v742_v52 = vpop.permute.xlu1 %741 }
 0xa2b   :  { %v744_v54 = vmul.f32 %v742_v52, %v739_v51 }
 0xa2d   :  { %v746_v55 = vadd.f32 %v745_v53, %v744_v54 }
 0xa2f   :  { %748 = vrot.lane.b32.xlu0 %v746_v55, %s1800_s4 }
 0xaa1   :  { %v749_v56 = vpop.permute.xlu0 %748 }
 0xaa2   :  { %751 = vst.msk [vmem:[%s2176_s6 + $0x3] sm:$0x1] %vm219_vm2, %v749_v56  ;;  %1676 = vmatmul.mubr.msk.f32.vlgmr.msra.gmra.mxu1 %vm35_vm0, %v749_v56 }
 0xaa3   :  { %1690 = vmatpush3.msra.mxu1 %v1847_v2  ;;  %1697 = vmatprep.mubr.msk.f32.mxu1 %vm1798_vm1, %v1797_v0 }
 0xaa4   :  { %1691 = vmatprep.subr.mxu1 %v1797_v0 }
 0xaa5   :  { %1692 = vmatpush3.msra.mxu1 %v1859_v4 }
 0xaa6   :  { %1693 = vmatprep.subr.mxu1 %v1797_v0 }
 0xaa7   :  { %1694 = vmatpush3.msra.mxu1 %v1871_v6 }
 0xaa8   :  { %1695 = vmatprep.subr.mxu1 %v1797_v0 }
 0xaa9   :  { %1696 = vmatpush3.msra.mxu1 %v1887_v8 }
 0xaaa   :  { %1711 = vmatprep.subr.mxu1 %v1797_v0 }
 0xb62   :  { %v894_v59 = vpop.f32.mrf.mxu1 }
 0xb63   :  { %v895_v60 = vadd.f32 %v894_v59, %v1930_v11 }
 0xb64   :  { %v1677_v61 = vpop.f32.mrf.mxu1 }
 0xb65   :  { %906 = vrot.lane.b32.xlu1 %v895_v60, %s1799_s16  ;;  %v898_v63 = vadd.f32 %v895_v60, %v823_v62 }
 0xb67   :  { %v1478_v9 = vmul.f32 -1.442695, %v898_v63 }
 0xb69   :  { %1773 = vpow2.f32 %v1478_v9  ;;  %v1353_v9 = vpop.f32.mrf.mxu0 }
 0xb76   :  { %v1774_v10 = vpop.eup %1773 }
 0xb77   :  { %v902_v12 = vadd.f32 1.0, %v1774_v10  ;;  %v1732_v10 = vpop.f32.mrf.mxu0 }
 0xb79   :  { %1775 = vrcp.f32 %v902_v12 }
 0xb86   :  { %v1776_v13 = vpop.eup %1775 }
 0xb87   :  { %v916_v21 = vsub.f32 1.0, %v1776_v13  ;;  %v922_v23 = vmul.f32 %v1776_v13, %v746_v55 }
 0xbd7   :  { %v907_v14 = vpop.permute.xlu1 %906 }
 0xbd8   :  { %v909_v15 = vmul.f32 %v1776_v13, %v907_v14 }
 0xbda   :  { %911 = vrot.lane.b32.xlu0 %v909_v15, %s1799_s16  ;;  %v1354_v15 = vadd.f32 %v1353_v9, %v1937_v17 }
 0xc4c   :  { %v912_v16 = vpop.permute.xlu0 %911 }
 0xc4d   :  { %v914_v18 = vadd.f32 %v912_v16, %v823_v62 }
 0xc4f   :  { %1777 = vtanh.f32 %v914_v18 }
 0xc5c   :  { %v1778_v19 = vpop.eup %1777 }
 0xc5d   :  { %918 = vrot.lane.b32.xlu1 %v1778_v19, %s1800_s4 }
 0xccf   :  { %v919_v22 = vpop.permute.xlu1 %918 }
 0xcd0   :  { %v921_v24 = vmul.f32 %v919_v22, %v916_v21 }
 0xcd2   :  { %v923_v25 = vadd.f32 %v922_v23, %v921_v24 }
 0xcd4   :  { %925 = vrot.lane.b32.xlu0 %v923_v25, %s1800_s4 }
 0xd46   :  { %v926_v26 = vpop.permute.xlu0 %925 }
 0xd47   :  { %928 = vst.msk [vmem:[%s2176_s6 + $0x4] sm:$0x1] %vm219_vm2, %v926_v26  ;;  %1698 = vmatmul.mubr.msk.f32.vlgmr.msra.gmra.mxu1 %vm35_vm0, %v926_v26 }
 0xd48   :  { %1712 = vmatpush3.msra.mxu1 %v1847_v2  ;;  %1719 = vmatprep.mubr.msk.f32.mxu1 %vm1798_vm1, %v1797_v0 }
 0xd49   :  { %1713 = vmatprep.subr.mxu1 %v1797_v0 }
 0xd4a   :  { %1714 = vmatpush3.msra.mxu1 %v1859_v4 }
 0xd4b   :  { %1715 = vmatprep.subr.mxu1 %v1797_v0 }
 0xd4c   :  { %1716 = vmatpush3.msra.mxu1 %v1871_v6 }
 0xd4d   :  { %1717 = vmatprep.subr.mxu1 %v1797_v0 }
 0xd4e   :  { %1718 = vmatpush3.msra.mxu1 %v1887_v8 }
 0xd4f   :  { %1733 = vmatprep.subr.mxu1 %v1797_v0 }
 0xe07   :  { %v1071_v29 = vpop.f32.mrf.mxu1 }
 0xe08   :  { %v1072_v30 = vadd.f32 %v1071_v29, %v1930_v11 }
 0xe09   :  { %v1699_v31 = vpop.f32.mrf.mxu1 }
 0xe0a   :  { %1083 = vrot.lane.b32.xlu1 %v1072_v30, %s1799_s16  ;;  %v1075_v33 = vadd.f32 %v1072_v30, %v1000_v32 }
 0xe0c   :  { %v1481_v34 = vmul.f32 -1.442695, %v1075_v33 }
 0xe0e   :  { %1779 = vpow2.f32 %v1481_v34 }
 0xe1b   :  { %v1780_v35 = vpop.eup %1779 }
 0xe1c   :  { %v1079_v36 = vadd.f32 1.0, %v1780_v35 }
 0xe1e   :  { %1781 = vrcp.f32 %v1079_v36 }
 0xe2b   :  { %v1782_v37 = vpop.eup %1781 }
 0xe2c   :  { %v1093_v44 = vsub.f32 1.0, %v1782_v37  ;;  %v1099_v46 = vmul.f32 %v1782_v37, %v923_v25 }
 0xe7c   :  { %v1084_v38 = vpop.permute.xlu1 %1083 }
 0xe7d   :  { %v1086_v39 = vmul.f32 %v1782_v37, %v1084_v38 }
 0xe7f   :  { %1088 = vrot.lane.b32.xlu0 %v1086_v39, %s1799_s16 }
 0xef1   :  { %v1089_v40 = vpop.permute.xlu0 %1088 }
 0xef2   :  { %v1091_v41 = vadd.f32 %v1089_v40, %v1000_v32 }
 0xef4   :  { %1783 = vtanh.f32 %v1091_v41 }
 0xf01   :  { %v1784_v42 = vpop.eup %1783 }
 0xf02   :  { %1095 = vrot.lane.b32.xlu1 %v1784_v42, %s1800_s4 }
 0xf74   :  { %v1096_v45 = vpop.permute.xlu1 %1095 }
 0xf75   :  { %v1098_v47 = vmul.f32 %v1096_v45, %v1093_v44 }
 0xf77   :  { %v1100_v1 = vadd.f32 %v1099_v46, %v1098_v47 }
 0xf79   :  { %1102 = vrot.lane.b32.xlu0 %v1100_v1, %s1800_s4 }
 0xfeb   :  { %v1103_v48 = vpop.permute.xlu0 %1102 }
 0xfec   :  { %1105 = vst.msk [vmem:[%s2176_s6 + $0x5] sm:$0x1] %vm219_vm2, %v1103_v48  ;;  %1720 = vmatmul.mubr.msk.f32.vlgmr.msra.gmra.mxu1 %vm35_vm0, %v1103_v48 }
 0xfed   :  { %1734 = vmatpush3.msra.mxu1 %v1847_v2  ;;  %1741 = vmatprep.mubr.msk.f32.mxu1 %vm1798_vm1, %v1797_v0 }
 0xfee   :  { %1735 = vmatprep.subr.mxu1 %v1797_v0 }
 0xfef   :  { %1736 = vmatpush3.msra.mxu1 %v1859_v4 }
 0xff0   :  { %1737 = vmatprep.subr.mxu1 %v1797_v0 }
 0xff1   :  { %1738 = vmatpush3.msra.mxu1 %v1871_v6 }
 0xff2   :  { %1739 = vmatprep.subr.mxu1 %v1797_v0 }
 0xff3   :  { %1740 = vmatpush3.msra.mxu1 %v1887_v8 }
0x10ac   :  { %v1248_v7 = vpop.f32.mrf.mxu1 }
0x10ad   :  { %v1249_v2 = vadd.f32 %v1248_v7, %v1930_v11 }
0x10ae   :  { %v1721_v49 = vpop.f32.mrf.mxu1 }
0x10af   :  { %1260 = vrot.lane.b32.xlu1 %v1249_v2, %s1799_s16  ;;  %v1252_v51 = vadd.f32 %v1249_v2, %v1177_v50 }
0x10b1   :  { %v1484_v4 = vmul.f32 -1.442695, %v1252_v51 }
0x10b3   :  { %1785 = vpow2.f32 %v1484_v4 }
0x10c0   :  { %v1786_v52 = vpop.eup %1785 }
0x10c1   :  { %v1256_v53 = vadd.f32 1.0, %v1786_v52 }
0x10c3   :  { %1787 = vrcp.f32 %v1256_v53 }
0x10d0   :  { %v1788_v6 = vpop.eup %1787 }
0x10d1   :  { %v1270_v58 = vsub.f32 1.0, %v1788_v6  ;;  %v1276_v60 = vmul.f32 %v1788_v6, %v1100_v1 }
0x1121   :  { %v1261_v0 = vpop.permute.xlu1 %1260 }
0x1122   :  { %v1263_v54 = vmul.f32 %v1788_v6, %v1261_v0 }
0x1124   :  { %1265 = vrot.lane.b32.xlu0 %v1263_v54, %s1799_s16 }
0x1196   :  { %v1266_v8 = vpop.permute.xlu0 %1265 }
0x1197   :  { %v1268_v55 = vadd.f32 %v1266_v8, %v1177_v50 }
0x1199   :  { %1789 = vtanh.f32 %v1268_v55 }
0x11a6   :  { %v1790_v56 = vpop.eup %1789 }
0x11a7   :  { %1272 = vrot.lane.b32.xlu1 %v1790_v56, %s1800_s4 }
0x1219   :  { %v1273_v59 = vpop.permute.xlu1 %1272 }
0x121a   :  { %v1275_v61 = vmul.f32 %v1273_v59, %v1270_v58 }
0x121c   :  { %v1277_v62 = vadd.f32 %v1276_v60, %v1275_v61 }
0x121e   :  { %1279 = vrot.lane.b32.xlu0 %v1277_v62, %s1800_s4 }
0x1290   :  { %v1280_v63 = vpop.permute.xlu0 %1279 }
0x1291   :  { %1282 = vst.msk [vmem:[%s2176_s6 + $0x6] sm:$0x1] %vm219_vm2, %v1280_v63  ;;  %1742 = vmatmul.mubr.msk.f32.vlgmr.msra.gmra.mxu1 %vm35_vm0, %v1280_v63 }
0x1351   :  { %v1425_v12 = vpop.f32.mrf.mxu1 }
0x1352   :  { %v1426_v13 = vadd.f32 %v1425_v12, %v1930_v11 }
0x1353   :  { %v1743_v14 = vpop.f32.mrf.mxu1 }
0x1354   :  { %1437 = vrot.lane.b32.xlu1 %v1426_v13, %s1799_s16  ;;  %v1429_v16 = vadd.f32 %v1426_v13, %v1354_v15 }
0x1356   :  { %v1487_v18 = vmul.f32 -1.442695, %v1429_v16 }
0x1358   :  { %1791 = vpow2.f32 %v1487_v18 }
0x1365   :  { %v1792_v19 = vpop.eup %1791 }
0x1366   :  { %v1433_v20 = vadd.f32 1.0, %v1792_v19 }
0x1368   :  { %1793 = vrcp.f32 %v1433_v20 }
0x1375   :  { %v1794_v21 = vpop.eup %1793 }
0x1376   :  { %v1447_v26 = vsub.f32 1.0, %v1794_v21  ;;  %v1453_v17 = vmul.f32 %v1794_v21, %v1277_v62 }
0x13c6   :  { %v1438_v22 = vpop.permute.xlu1 %1437 }
0x13c7   :  { %v1440_v23 = vmul.f32 %v1794_v21, %v1438_v22 }
0x13c9   :  { %1442 = vrot.lane.b32.xlu0 %v1440_v23, %s1799_s16 }
0x143b   :  { %v1443_v24 = vpop.permute.xlu0 %1442 }
0x143c   :  { %v1445_v25 = vadd.f32 %v1443_v24, %v1354_v15 }
0x143e   :  { %1795 = vtanh.f32 %v1445_v25 }
0x144b   :  { %v1796_v11 = vpop.eup %1795 }
0x144c   :  { %1449 = vrot.lane.b32.xlu1 %v1796_v11, %s1800_s4 }
0x14be   :  { %v1450_v27 = vpop.permute.xlu1 %1449 }
0x14bf   :  { %v1452_v28 = vmul.f32 %v1450_v27, %v1447_v26 }
0x14c1   :  { %v1454_v29 = vadd.f32 %v1453_v17, %v1452_v28 }
0x14c3   :  { %1456 = vrot.lane.b32.xlu0 %v1454_v29, %s1800_s4 }
0x1535   :  { %v1457_v30 = vpop.permute.xlu0 %1456 }
0x1536   :  { %1459 = vst.msk [vmem:[%s2176_s6 + $0x7] sm:$0x1] %vm219_vm2, %v1457_v30 }

</bundles_post_ra>
